<compile_context>
chip_gen: v6e
topology: v6e:2x2x1
jax: 0.10.0
libtpu: 0.0.40
codegen_flags: <defaults>
</compile_context>

<pallas_src>
from functools import partial

import jax
import jax.numpy as jnp
from jax import lax
from jax.experimental import pallas as pl
from jax.experimental.pallas import tpu as pltpu

_LN_INV_255 = -5.541263545158426      # ln(1/255)  -> alpha cutoff expressed on msig
_LN_0_999 = -0.0010005003335835335    # ln(0.999)  -> 0.999 cap folded before exp
_PAD_NEG = -1.0e9                     # msig for padded gaussians -> masked by msig itself


def _raster_sum_kernel(g_ref, feats_ref, q_ref, out_ref):
    """One grid step: TP pixels (lanes) x TG gaussians (sublanes).

    g_ref     : (8, TG) f32 rows = [const, cpx, cpy, na, nb, nc, 0, 0]
                per-gaussian coefficients of msig over the pixel-monomial basis
    feats_ref : (3, TG) f32 per-gaussian RGB features (scaled by rgb_W, zero for pads)
    q_ref     : (8, TP) f32 rows = [1, px, py, px*px, px*py, py*py, 0, 0]  (centered coords)
    out_ref   : (3, TP) f32 resident accumulator across the gaussian axis; clipped on last k
    """
    k = pl.program_id(1)

    @pl.when(k == 0)
    def _():
        out_ref[...] = jnp.zeros_like(out_ref)

    # msig = -sigma, on the MXU: contract the 8-row coefficient axis of both operands.
    msig = lax.dot_general(
        g_ref[...], q_ref[...],
        dimension_numbers=(((0,), (0,)), ((), ())),
        preferred_element_type=jnp.float32)                       # (TG, TP)

    # Validity depends only on msig (not on the EUP exp result), so the VLIW packer can
    # overlap the EUP latency with this compare/and chain.
    valid = (msig <= 0.0) & (msig >= _LN_INV_255)
    alpha = jnp.exp(jnp.minimum(msig, _LN_0_999))                 # EUP; 0.999 cap pre-folded
    alpha = jnp.where(valid, alpha, 0.0)                          # (TG, TP)

    # hot reduction: (3, TG) @ (TG, TP) on the MXU, accumulated in f32 directly in out_ref
    out_ref[...] += jnp.dot(feats_ref[...], alpha, preferred_element_type=jnp.float32)

    @pl.when(k == pl.num_programs(1) - 1)
    def _():
        out_ref[...] = jnp.clip(out_ref[...], 0.0, 1.0)


def rasterize_gaussians_sum_pallas(g, feats, q, TP, TG):
    """g: (8, NPAD) f32, feats: (3, NPAD) f32, q: (8, PPAD) f32 -> (3, PPAD) f32."""
    NPAD = g.shape[1]
    PPAD = q.shape[1]
    assert NPAD % TG == 0 and PPAD % TP == 0

    # VMEM budget: a handful of live (TG, TP) f32 temporaries (msig / mask / alpha) dominate;
    # input/output blocks are tiny.  Clamp to [32 MiB, 48 MiB] (covers v5e's 16 MiB default
    # scoped limit, leaves headroom under v7x's 64 MiB physical VMEM).
    live_bytes = 6 * TG * TP * 4
    io_bytes = 2 * 4 * (8 * TG + 3 * TG + 8 * TP + 3 * TP)
    vmem_limit = int(min(max(live_bytes + io_bytes + (8 << 20), 32 << 20), 48 << 20))

    return pl.pallas_call(
        _raster_sum_kernel,
        out_shape=jax.ShapeDtypeStruct((3, PPAD), jnp.float32),
        grid_spec=pltpu.PrefetchScalarGridSpec(
            num_scalar_prefetch=0,
            grid=(PPAD // TP, NPAD // TG),       # pixel tiles (parallel), gaussian tiles (reduction, last)
            in_specs=[
                pl.BlockSpec((8, TG), lambda i, k: (0, k)),   # msig coefficients, lane-dense
                pl.BlockSpec((3, TG), lambda i, k: (0, k)),   # RGB features, lane-dense
                pl.BlockSpec((8, TP), lambda i, k: (0, i)),   # pixel monomials
            ],
            out_specs=pl.BlockSpec((3, TP), lambda i, k: (0, i)),  # resident, lane-dense output slab
        ),
        compiler_params=pltpu.CompilerParams(
            dimension_semantics=("parallel", "arbitrary"),
            vmem_limit_bytes=vmem_limit),
    )(g, feats, q)


def gaussian_video_frame_forward(_xyz, _cholesky, _features_dc, rgb_W, H, W,
                                 TP=2048, TG=256):
    """JAX glue (projection, O(N)) + Pallas rasterization (hot path, O(N*H*W))."""
    N = _xyz.shape[0]
    P = H * W

    # --- tile selection ---
    # gaussian tile: multiple of 128, no larger than the padded gaussian count
    TG = min(TG, max(128, pl.cdiv(N, 128) * 128))
    # pixel tile: multiple of 128; keep >= 4 tiles on the "parallel" axis when possible
    TP = min(TP, max(128, (P // 4) // 128 * 128))
    NPAD = pl.cdiv(N, TG) * TG
    PPAD = pl.cdiv(P, TP) * TP

    # --- projection (project_gaussians_2d semantics), in frame-centered coordinates ---
    cx = 0.5 * (W - 1.0)
    cy = 0.5 * (H - 1.0)
    xy = jnp.tanh(_xyz.astype(jnp.float32))                          # get_xyz
    gx = (xy[:, 0] + 1.0) * 0.5 * W - 0.5 - cx
    gy = (xy[:, 1] + 1.0) * 0.5 * H - 0.5 - cy

    chol = _cholesky.astype(jnp.float32) + jnp.array([0.5, 0.0, 0.5], jnp.float32)
    l1, l2, l3 = chol[:, 0], chol[:, 1], chol[:, 2]
    s11 = l1 * l1
    s12 = l1 * l2
    s22 = l2 * l2 + l3 * l3
    det = s11 * s22 - s12 * s12      # = (l1*l3)^2 ; det~0 gaussians yield NaN/inf coefficients
    inv_det = 1.0 / det              # and are dropped by the msig validity mask (as in gsplat)
    na = -0.5 * s22 * inv_det        # -(0.5 * conic_a)
    nb = s12 * inv_det               # -conic_b   (conic_b = -s12/det)
    nc = -0.5 * s11 * inv_det        # -(0.5 * conic_c)

    # msig(px,py) = const + cpx*px + cpy*py + na*px^2 + nb*px*py + nc*py^2   (centered coords)
    const = na * gx * gx + nb * gx * gy + nc * gy * gy
    cpx = -(2.0 * na * gx + nb * gy)
    cpy = -(nb * gx + 2.0 * nc * gy)
    zeros_n = jnp.zeros((N,), jnp.float32)
    g = jnp.stack([const, cpx, cpy, na, nb, nc, zeros_n, zeros_n], axis=0)   # (8, N) lane-dense
    g = jnp.pad(g, ((0, 0), (0, NPAD - N)))
    if NPAD > N:
        # padded gaussians get msig = -1e9 -> masked by msig itself (feats padding also zero)
        g = g.at[0, N:].set(_PAD_NEG)

    feats = (_features_dc.astype(jnp.float32) * rgb_W.astype(jnp.float32)).T  # (3, N) get_features
    feats = jnp.pad(feats, ((0, 0), (0, NPAD - N)))                           # (3, NPAD)

    lin = jnp.arange(P, dtype=jnp.int32)
    px = (lin % W).astype(jnp.float32) - cx
    py = (lin // W).astype(jnp.float32) - cy
    ones_p = jnp.ones((P,), jnp.float32)
    zeros_p = jnp.zeros((P,), jnp.float32)
    q = jnp.stack([ones_p, px, py, px * px, px * py, py * py, zeros_p, zeros_p], axis=0)
    q = jnp.pad(q, ((0, 0), (0, PPAD - P)))                                   # (8, PPAD)

    out = rasterize_gaussians_sum_pallas(g, feats, q, TP, TG)                 # (3, PPAD)

    # (3, H*W) IS the NCHW layout -> plain reshape, no transpose
    out_img = out[:, :P].reshape(1, 3, H, W)
    return {"render": out_img}


def _reference_forward(_xyz, _cholesky, _features_dc, rgb_W, H, W):
    """Pure-JAX reference of the same forward pass (for correctness checking)."""
    xy = jnp.tanh(_xyz)
    gx = (xy[:, 0] + 1.0) * 0.5 * W - 0.5
    gy = (xy[:, 1] + 1.0) * 0.5 * H - 0.5
    chol = _cholesky + jnp.array([0.5, 0.0, 0.5], jnp.float32)
    l1, l2, l3 = chol[:, 0], chol[:, 1], chol[:, 2]
    s11, s12, s22 = l1 * l1, l1 * l2, l2 * l2 + l3 * l3
    det = s11 * s22 - s12 * s12
    a, b, c = s22 / det, -s12 / det, s11 / det
    lin = jnp.arange(H * W)
    px = (lin % W).astype(jnp.float32)
    py = (lin // W).astype(jnp.float32)
    dx = gx[None, :] - px[:, None]
    dy = gy[None, :] - py[:, None]
    sigma = 0.5 * (a * dx * dx + c * dy * dy) + b * dx * dy
    alpha = jnp.minimum(0.999, jnp.exp(-sigma))
    valid = (sigma >= 0.0) & (alpha >= (1.0 / 255.0))
    alpha = jnp.where(valid, alpha, 0.0)
    feats = _features_dc * rgb_W
    img = jnp.clip(alpha @ feats, 0.0, 1.0)                          # (P, 3)
    return img.reshape(1, H, W, 3).transpose(0, 3, 1, 2)


if __name__ == "__main__":
    # small, deterministic configuration consistent with the module's __init__
    N = 100            # init_num_points
    H = W = 32         # frame size
    key = jax.random.PRNGKey(0)
    k1, k2, k3 = jax.random.split(key, 3)

    # _xyz = atanh(2*(rand - 0.5)),  _cholesky = rand,  _features_dc = rand
    _xyz = jnp.arctanh(2.0 * (jax.random.uniform(k1, (N, 2)) - 0.5)).astype(jnp.float32)
    _cholesky = jax.random.uniform(k2, (N, 3)).astype(jnp.float32)
    _features_dc = jax.random.uniform(k3, (N, 3)).astype(jnp.float32)
    rgb_W = 0.01 * jnp.ones((N, 1), jnp.float32)       # isremoval=True branch

    fwd = jax.jit(partial(gaussian_video_frame_forward, H=H, W=W))
    out = fwd(_xyz, _cholesky, _features_dc, rgb_W)
    img = jax.block_until_ready(out["render"])

    ref = jax.block_until_ready(
        _reference_forward(_xyz, _cholesky, _features_dc, rgb_W, H, W))

    assert img.shape == (1, 3, H, W), img.shape
    assert bool(jnp.all(jnp.isfinite(img)))
    assert bool(jnp.all((img >= 0.0) & (img <= 1.0)))
    assert float(jnp.max(jnp.abs(img - ref))) < 1e-2, float(jnp.max(jnp.abs(img - ref)))
    print("KERNEL_OK")
</pallas_src>

<mosaic_0001>
module attributes {stable_mosaic.version = 11 : i64} {
  func.func @_raster_sum_kernel(%arg0: i32, %arg1: i32, %arg2: memref<8x128xf32, #tpu.memory_space<vmem>>, %arg3: memref<3x128xf32, #tpu.memory_space<vmem>>, %arg4: memref<8x256xf32, #tpu.memory_space<vmem>>, %arg5: memref<3x256xf32, #tpu.memory_space<vmem>>) attributes {dimension_semantics = [#tpu.dimension_semantics<parallel>, #tpu.dimension_semantics<arbitrary>], iteration_bounds = array<i64: 4, 1>, scalar_prefetch = 0 : i64, scratch_operands = 0 : i64, tpu.core_type = #tpu.core_type<tc>, window_params = [{transform_indices = @transform_0, window_bounds = array<i64: 8, 128>}, {transform_indices = @transform_1, window_bounds = array<i64: 3, 128>}, {transform_indices = @transform_2, window_bounds = array<i64: 8, 256>}, {transform_indices = @transform_3, window_bounds = array<i64: 3, 256>}]} {
    %c0_i32 = arith.constant 0 : i32
    %0 = arith.cmpi eq, %arg1, %c0_i32 : i32
    %1 = arith.extui %0 : i1 to i32
    %c0_i32_0 = arith.constant 0 : i32
    %2 = arith.cmpi ne, %1, %c0_i32_0 : i32
    scf.if %2 {
      %cst_17 = arith.constant 0.000000e+00 : f32
      %24 = vector.broadcast %cst_17 : f32 to vector<3x256xf32>
      %c0_18 = arith.constant 0 : index
      %c0_19 = arith.constant 0 : index
      %25 = vector.load %arg5[%c0_18, %c0_19] : memref<3x256xf32, #tpu.memory_space<vmem>>, vector<3x256xf32>
      tpu.vector_store %arg5[%c0_18, %c0_19], %24 {strides = array<i32>} : memref<3x256xf32, #tpu.memory_space<vmem>>, vector<3x256xf32>,
    } else {
    }
    %c0 = arith.constant 0 : index
    %c0_1 = arith.constant 0 : index
    %3 = vector.load %arg2[%c0, %c0_1] : memref<8x128xf32, #tpu.memory_space<vmem>>, vector<8x128xf32>
    %c0_2 = arith.constant 0 : index
    %c0_3 = arith.constant 0 : index
    %4 = vector.load %arg4[%c0_2, %c0_3] : memref<8x256xf32, #tpu.memory_space<vmem>>, vector<8x256xf32>
    %cst = arith.constant dense<0.000000e+00> : vector<128x256xf32>
    %5 = tpu.matmul %3, %4, %cst {dimension_numbers = #tpu.dot_dimension_numbers<[0], [0], [1], [1], [0, 1, 1, 1], [], []>} : vector<8x128xf32>, vector<8x256xf32>, vector<128x256xf32> -> vector<128x256xf32>
    %cst_4 = arith.constant 0.000000e+00 : f32
    %6 = vector.broadcast %cst_4 : f32 to vector<128x256xf32>
    %7 = arith.cmpf ole, %5, %6 : vector<128x256xf32>
    %cst_5 = arith.constant -5.54126358 : f32
    %8 = vector.broadcast %cst_5 : f32 to vector<128x256xf32>
    %9 = arith.cmpf oge, %5, %8 : vector<128x256xf32>
    %10 = arith.andi %7, %9 : vector<128x256xi1>
    %cst_6 = arith.constant -0.00100050028 : f32
    %11 = vector.broadcast %cst_6 : f32 to vector<128x256xf32>
    %12 = arith.minimumf %5, %11 : vector<128x256xf32>
    %13 = math.exp %12 : vector<128x256xf32>
    %cst_7 = arith.constant 0.000000e+00 : f32
    %14 = vector.broadcast %cst_7 : f32 to vector<128x256xf32>
    %15 = arith.select %10, %13, %14 : vector<128x256xi1>, vector<128x256xf32>
    %c0_8 = arith.constant 0 : index
    %c0_9 = arith.constant 0 : index
    %16 = vector.load %arg5[%c0_8, %c0_9] : memref<3x256xf32, #tpu.memory_space<vmem>>, vector<3x256xf32>
    %c0_10 = arith.constant 0 : index
    %c0_11 = arith.constant 0 : index
    %17 = vector.load %arg3[%c0_10, %c0_11] : memref<3x128xf32, #tpu.memory_space<vmem>>, vector<3x128xf32>
    %cst_12 = arith.constant dense<0.000000e+00> : vector<3x256xf32>
    %18 = tpu.matmul %17, %15, %cst_12 {dimension_numbers = #tpu.dot_dimension_numbers<[1], [0], [0], [1], [0, 0, 1, 1], [], []>} : vector<3x128xf32>, vector<128x256xf32>, vector<3x256xf32> -> vector<3x256xf32>
    %19 = arith.addf %16, %18 : vector<3x256xf32>
    %c0_13 = arith.constant 0 : index
    %c0_14 = arith.constant 0 : index
    %20 = vector.load %arg5[%c0_13, %c0_14] : memref<3x256xf32, #tpu.memory_space<vmem>>, vector<3x256xf32>
    tpu.vector_store %arg5[%c0_13, %c0_14], %19 {strides = array<i32>} : memref<3x256xf32, #tpu.memory_space<vmem>>, vector<3x256xf32>,
    %c0_i32_15 = arith.constant 0 : i32
    %21 = arith.cmpi eq, %arg1, %c0_i32_15 : i32
    %22 = arith.extui %21 : i1 to i32
    %c0_i32_16 = arith.constant 0 : i32
    %23 = arith.cmpi ne, %22, %c0_i32_16 : i32
    scf.if %23 {
      %c0_17 = arith.constant 0 : index
      %c0_18 = arith.constant 0 : index
      %24 = vector.load %arg5[%c0_17, %c0_18] : memref<3x256xf32, #tpu.memory_space<vmem>>, vector<3x256xf32>
      %cst_19 = arith.constant 0.000000e+00 : f32
      %cst_20 = arith.constant 1.000000e+00 : f32
      %25 = vector.broadcast %cst_19 : f32 to vector<3x256xf32>
      %26 = arith.maximumf %25, %24 : vector<3x256xf32>
      %27 = vector.broadcast %cst_20 : f32 to vector<3x256xf32>
      %28 = arith.minimumf %27, %26 : vector<3x256xf32>
      %c0_21 = arith.constant 0 : index
      %c0_22 = arith.constant 0 : index
      %29 = vector.load %arg5[%c0_21, %c0_22] : memref<3x256xf32, #tpu.memory_space<vmem>>, vector<3x256xf32>
      tpu.vector_store %arg5[%c0_21, %c0_22], %28 {strides = array<i32>} : memref<3x256xf32, #tpu.memory_space<vmem>>, vector<3x256xf32>,
    } else {
    }
    return
  }
  func.func @transform_0(%arg0: i32, %arg1: i32) -> (i32, i32) {
    %c0_i32 = arith.constant 0 : i32
    %c0_i32_0 = arith.constant 0 : i32
    return %c0_i32, %arg1 : i32, i32
  }
  func.func @transform_1(%arg0: i32, %arg1: i32) -> (i32, i32) {
    %c0_i32 = arith.constant 0 : i32
    %c0_i32_0 = arith.constant 0 : i32
    return %c0_i32, %arg1 : i32, i32
  }
  func.func @transform_2(%arg0: i32, %arg1: i32) -> (i32, i32) {
    %c0_i32 = arith.constant 0 : i32
    %c0_i32_0 = arith.constant 0 : i32
    return %c0_i32, %arg0 : i32, i32
  }
  func.func @transform_3(%arg0: i32, %arg1: i32) -> (i32, i32) {
    %c0_i32 = arith.constant 0 : i32
    %c0_i32_0 = arith.constant 0 : i32
    return %c0_i32, %arg0 : i32, i32
  }
}

</mosaic_0001>

<bundles_post_ra>
// kernel: gaussian_video_frame_forward.1
= control target key start
LH: loop header
LB: loop body
LE: loop exit
PB: predicated region body
PF: predicated region fallthrough
CT: control target
= control target key end

     0   :  { %s1070_s12 = smov 0   ;;  %s1072_s13 = smov 0   ;;  %s1430_s0 = inlined_call_operand.vmem [shape: f32[8,128], index: 0, kind: input, shape index: {}]   ;;  %s1431_s1 = inlined_call_operand.vmem [shape: f32[3,128], index: 1, kind: input, shape index: {}]   ;;  %s1432_s2 = inlined_call_operand.vmem [shape: f32[8,1024], index: 2, kind: input, shape index: {}]   ;;  %s1433_s3 = inlined_call_operand.vmem [shape: f32[3,1024], index: 3, kind: output, shape index: {}]  }
   0x1   :  { %s1074_s14 = smov 0  }
   0x2 LB: > { %s25_s15 = sadd.s32 1, %s1043_s13  ;;  %p881_p0 = scmp.ge.s32.totalorder %s1047_s14, 1  ;;  %s1047_s14 = sphi %s1074_s14, %s13_s14   ;;  %s1043_s13 = sphi %s1072_s13, %s1435_s13   ;;  %s1039_s12 = sphi %s1070_s12, %s1434_s12  }
   0x3   : > { %p27_p1 = scmp.ge.s32.totalorder %s25_s15, 4  ;;  %p168_p2 = scmp.lt.s32.totalorder %s1047_s14, 5 }
   0x5   : > { %s1437_s15 = smov (%p27_p1, %s25_s15), 0  ;;  %p169_p3 = pnand %p881_p0, %p168_p2 }
   0x6   : > { %s882_s18 = sshll.u32 (!%p169_p3), %s1039_s12, 1 }
   0x7   : > { %172 = sbr.rel (%p169_p3) target bundleno = 655 (0x28f), region = 32  ;;  %p209_p4 = scmp.lt.s32.totalorder (!%p169_p3), %s882_s18, 7 }
   0xc   : > { %v225_v0 = vld [vmem:[%s1430_s0] sm:$0xff]  ;;  %v1049_v1 = vmov 0.0   ;;  %s1439_s18 = smov (!%p209_p4, %s882_s18), 7  ;;  %vm260_vm0 = vcmask 64512  }
   0xd   : > { %228 = vxpose.xlu0.b32.start.end [1/1] (short) %v225_v0, 128  ;;  %373 = vmatprep.mubr.f32.mxu0 %v1049_v1  ;;  %s883_s19 = sshll.u32 %s1439_s18, 3  ;;  %s885_s20 = sshll.u32 %s1439_s18, 2 }
   0xe   : > { %760 = vmatprep.mubr.f32.mxu1 %v1049_v1  ;;  %s212_s23 = scalar_lea.vmem %s1432_s2, %s883_s19  ;;  %s1097_s26 = scalar_lea.vmem %s1433_s3, %s885_s20 }
   0xf   : > { %224 = vst [vmem:[%s1097_s26] sm:$0x77] %v1049_v1  ;;  %v227_v2 = vld [vmem:[%s212_s23 + $0x8] sm:$0xff]  ;;  %v226_v3 = vld [vmem:[%s212_s23] sm:$0xff] }
  0x10   : > { %339 = vmatprep.subr.mxu0 %v227_v2 }
  0x11   : > { %340 = vmatpush1.msra.mxu0 %v226_v3 }
  0x89   : > { %v244_v4 = vpop.trf.xlu0 }
  0x8a   : > { %886 = vmatmul.mubr.msk.f32.vlgmr.msra.gmra.mxu0 %vm260_vm0, %v244_v4 }
  0x8b   : > { %379 = vmatprep.mubr.f32.mxu0 %v1049_v1 }
  0x8d   : > { %v245_v5 = vpop.trf.xlu0 }
  0x8e   : > { %887 = vmatmul.mubr.msk.f32.gmra.mxu0 %vm260_vm0, %v245_v5 }
  0x8f   : > { %385 = vmatprep.mubr.f32.mxu0 %v1049_v1 }
  0x91   : > { %v246_v6 = vpop.trf.xlu0 }
  0x92   : > { %888 = vmatmul.mubr.msk.f32.gmra.mxu0 %vm260_vm0, %v246_v6 }
  0x93   : > { %391 = vmatprep.mubr.f32.mxu0 %v1049_v1 }
  0x95   : > { %v247_v7 = vpop.trf.xlu0 }
  0x96   : > { %889 = vmatmul.mubr.msk.f32.gmra.mxu0 %vm260_vm0, %v247_v7 }
  0x97   : > { %397 = vmatprep.mubr.f32.mxu0 %v1049_v1 }
  0x99   : > { %v248_v8 = vpop.trf.xlu0 }
  0x9a   : > { %890 = vmatmul.mubr.msk.f32.gmra.mxu0 %vm260_vm0, %v248_v8 }
  0x9b   : > { %403 = vmatprep.mubr.f32.mxu0 %v1049_v1 }
  0x9d   : > { %v249_v9 = vpop.trf.xlu0 }
  0x9e   : > { %891 = vmatmul.mubr.msk.f32.gmra.mxu0 %vm260_vm0, %v249_v9 }
  0x9f   : > { %409 = vmatprep.mubr.f32.mxu0 %v1049_v1 }
  0xa1   : > { %v250_v10 = vpop.trf.xlu0 }
  0xa2   : > { %892 = vmatmul.mubr.msk.f32.gmra.mxu0 %vm260_vm0, %v250_v10 }
  0xa3   : > { %415 = vmatprep.mubr.f32.mxu0 %v1049_v1 }
  0xa5   : > { %v251_v11 = vpop.trf.xlu0 }
  0xa6   : > { %893 = vmatmul.mubr.msk.f32.gmra.mxu0 %vm260_vm0, %v251_v11 }
  0xa7   : > { %421 = vmatprep.mubr.f32.mxu0 %v1049_v1 }
  0xa9   : > { %v252_v12 = vpop.trf.xlu0 }
  0xaa   : > { %894 = vmatmul.mubr.msk.f32.gmra.mxu0 %vm260_vm0, %v252_v12 }
  0xab   : > { %427 = vmatprep.mubr.f32.mxu0 %v1049_v1 }
  0xad   : > { %v253_v13 = vpop.trf.xlu0 }
  0xae   : > { %895 = vmatmul.mubr.msk.f32.gmra.mxu0 %vm260_vm0, %v253_v13 }
  0xaf   : > { %433 = vmatprep.mubr.f32.mxu0 %v1049_v1 }
  0xb1   : > { %v254_v14 = vpop.trf.xlu0 }
  0xb2   : > { %896 = vmatmul.mubr.msk.f32.gmra.mxu0 %vm260_vm0, %v254_v14 }
  0xb3   : > { %439 = vmatprep.mubr.f32.mxu0 %v1049_v1 }
  0xb5   : > { %v255_v15 = vpop.trf.xlu0 }
  0xb6   : > { %897 = vmatmul.mubr.msk.f32.gmra.mxu0 %vm260_vm0, %v255_v15 }
  0xb7   : > { %445 = vmatprep.mubr.f32.mxu0 %v1049_v1 }
  0xb9   : > { %v256_v16 = vpop.trf.xlu0 }
  0xba   : > { %898 = vmatmul.mubr.msk.f32.gmra.mxu0 %vm260_vm0, %v256_v16 }
  0xbb   : > { %451 = vmatprep.mubr.f32.mxu0 %v1049_v1 }
  0xbd   : > { %v257_v17 = vpop.trf.xlu0 }
  0xbe   : > { %899 = vmatmul.mubr.msk.f32.gmra.mxu0 %vm260_vm0, %v257_v17 }
  0xbf   : > { %457 = vmatprep.mubr.f32.mxu0 %v1049_v1 }
  0xc1   : > { %v258_v18 = vpop.trf.xlu0 }
  0xc2   : > { %900 = vmatmul.mubr.msk.f32.gmra.mxu0 %vm260_vm0, %v258_v18 }
  0xc3   : > { %463 = vmatprep.mubr.f32.mxu0 %v1049_v1 }
  0xc5   : > { %v259_v19 = vpop.trf.xlu0 }
  0xc6   : > { %901 = vmatmul.mubr.msk.f32.gmra.mxu0 %vm260_vm0, %v259_v19 }
 0x14a   : > { %v1116_v20 = vpop.f32.mrf.mxu0 }
 0x14b   : > { %v566_v53 = vmin.f32 %v1116_v20, -0.0010005003 }
 0x14c   : > { %v1118_v21 = vpop.f32.mrf.mxu0 }
 0x14d   : > { %v567_v56 = vmin.f32 %v1118_v21, -0.0010005003 }
 0x14e   : > { %v1120_v22 = vpop.f32.mrf.mxu0 }
 0x14f   : > { %v568_v59 = vmin.f32 %v1120_v22, -0.0010005003 }
 0x150   : > { %v1122_v23 = vpop.f32.mrf.mxu0 }
 0x151   : > { %v569_v1 = vmin.f32 %v1122_v23, -0.0010005003 }
 0x152   : > { %v1124_v24 = vpop.f32.mrf.mxu0 }
 0x153   : > { %v570_v4 = vmin.f32 %v1124_v24, -0.0010005003 }
 0x154   : > { %v1126_v25 = vpop.f32.mrf.mxu0 }
 0x155   : > { %v571_v7 = vmin.f32 %v1126_v25, -0.0010005003 }
 0x156   : > { %v1128_v26 = vpop.f32.mrf.mxu0 }
 0x157   : > { %v572_v10 = vmin.f32 %v1128_v26, -0.0010005003 }
 0x158   : > { %v1130_v27 = vpop.f32.mrf.mxu0 }
 0x159   : > { %v573_v13 = vmin.f32 %v1130_v27, -0.0010005003 }
 0x15a   : > { %v1132_v28 = vpop.f32.mrf.mxu0 }
 0x15b   : > { %v574_v16 = vmin.f32 %v1132_v28, -0.0010005003 }
 0x15c   : > { %v1134_v29 = vpop.f32.mrf.mxu0 }
 0x15d   : > { %v575_v19 = vmin.f32 %v1134_v29, -0.0010005003 }
 0x15e   : > { %v1136_v30 = vpop.f32.mrf.mxu0 }
 0x160   : > { %v1138_v31 = vpop.f32.mrf.mxu0 }
 0x162   : > { %v1140_v32 = vpop.f32.mrf.mxu0 }
 0x164   : > { %v1142_v33 = vpop.f32.mrf.mxu0 }
 0x166   : > { %v1144_v34 = vpop.f32.mrf.mxu0 }
 0x168   : > { %v1146_v35 = vpop.f32.mrf.mxu0 }
 0x16a   : > { %v1148_v36 = vpop.f32.mrf.mxu0 }
 0x16c   : > { %v1150_v37 = vpop.f32.mrf.mxu0 }
 0x16e   : > { %v1152_v38 = vpop.f32.mrf.mxu0 }
 0x170   : > { %v1154_v39 = vpop.f32.mrf.mxu0 }
 0x171   : > { %v585_v17 = vmin.f32 %v1154_v39, -0.0010005003 }
 0x172   : > { %v1156_v40 = vpop.f32.mrf.mxu0 }
 0x173   : > { %v586_v14 = vmin.f32 %v1156_v40, -0.0010005003 }
 0x174   : > { %v1158_v41 = vpop.f32.mrf.mxu0 }
 0x175   : > { %v587_v11 = vmin.f32 %v1158_v41, -0.0010005003 }
 0x176   : > { %v1160_v42 = vpop.f32.mrf.mxu0 }
 0x177   : > { %v588_v8 = vmin.f32 %v1160_v42, -0.0010005003 }
 0x178   : > { %v1162_v43 = vpop.f32.mrf.mxu0 }
 0x179   : > { %v589_v5 = vmin.f32 %v1162_v43, -0.0010005003 }
 0x17a   : > { %v1164_v44 = vpop.f32.mrf.mxu0 }
 0x17b   : > { %v590_v2 = vmin.f32 %v1164_v44, -0.0010005003  ;;  %v644_v18 = vmul.f32 1.442695, %v589_v5  ;;  %v580_v5 = vmin.f32 %v1144_v34, -0.0010005003 }
 0x17c   : > { %v1166_v45 = vpop.f32.mrf.mxu0 }
 0x17d   : > { %v591_v62 = vmin.f32 %v1166_v45, -0.0010005003  ;;  %v646_v15 = vmul.f32 1.442695, %v590_v2  ;;  %v636_v2 = vmul.f32 1.442695, %v585_v17 }
 0x17e   : > { %v1168_v46 = vpop.f32.mrf.mxu0  ;;  %vm495_vm0 = vcmp.le.f32.partialorder %v1166_v45, 0.0 }
 0x17f   : > { %v592_v60 = vmin.f32 %v1168_v46, -0.0010005003  ;;  %v648_v12 = vmul.f32 1.442695, %v591_v62  ;;  %v638_v62 = vmul.f32 1.442695, %v586_v14 }
 0x180   : > { %v1170_v47 = vpop.f32.mrf.mxu0  ;;  %v626_v14 = vmul.f32 1.442695, %v580_v5  ;;  %vm496_vm13 = vcmp.le.f32.partialorder %v1168_v46, 0.0  ;;  %vm528_vm14 = vcmp.ge.f32.partialorder %v1168_v46, -5.5412636 }
 0x181   : > { %v593_v57 = vmin.f32 %v1170_v47, -0.0010005003  ;;  %v650_v9 = vmul.f32 1.442695, %v592_v60  ;;  %v577_v60 = vmin.f32 %v1138_v31, -0.0010005003 }
 0x182   : > { %v1172_v48 = vpop.f32.mrf.mxu0  ;;  %vm497_vm10 = vcmp.le.f32.partialorder %v1170_v47, 0.0  ;;  %vm529_vm11 = vcmp.ge.f32.partialorder %v1170_v47, -5.5412636  ;;  %v614_v47 = vmul.f32 1.442695, %v574_v16 }
 0x183   : > { %v594_v54 = vmin.f32 %v1172_v48, -0.0010005003  ;;  %v652_v6 = vmul.f32 1.442695, %v593_v57  ;;  %v583_v57 = vmin.f32 %v1150_v37, -0.0010005003 }
 0x184   : > { %v1174_v49 = vpop.f32.mrf.mxu0  ;;  %vm498_vm7 = vcmp.le.f32.partialorder %v1172_v48, 0.0  ;;  %vm530_vm8 = vcmp.ge.f32.partialorder %v1172_v48, -5.5412636  ;;  %v612_v46 = vmul.f32 1.442695, %v573_v13 }
 0x185   : > { %v595_v51 = vmin.f32 %v1174_v49, -0.0010005003  ;;  %v654_v3 = vmul.f32 1.442695, %v594_v54  ;;  %v576_v54 = vmin.f32 %v1136_v30, -0.0010005003 }
 0x186   : > { %v1176_v50 = vpop.f32.mrf.mxu0  ;;  %vm499_vm5 = vcmp.le.f32.partialorder %v1174_v49, 0.0  ;;  %vm531_vm6 = vcmp.ge.f32.partialorder %v1174_v49, -5.5412636 }
 0x187   : > { %v596_v52 = vmin.f32 %v1176_v50, -0.0010005003  ;;  %v656_v63 = vmul.f32 1.442695, %v595_v51  ;;  %v584_v51 = vmin.f32 %v1152_v38, -0.0010005003  ;;  %vm563_vm15 = vmand %vm499_vm5, %vm531_vm6 }
 0x188   : > { %v1182_v55 = vpop.f32.mrf.mxu0  ;;  %vm500_vm3 = vcmp.le.f32.partialorder %v1176_v50, 0.0  ;;  %vm532_vm4 = vcmp.ge.f32.partialorder %v1176_v50, -5.5412636  ;;  %vm561_vm5 = vmand %vm497_vm10, %vm529_vm11  ;;  %vm493_vm6 = vcmp.le.f32.partialorder %v1162_v43, 0.0  ;;  %vm524_vm10 = vcmp.ge.f32.partialorder %v1160_v42, -5.5412636 }
 0x189   : > { %v597_v58 = vmin.f32 %v1182_v55, -0.0010005003  ;;  %v658_v61 = vmul.f32 1.442695, %v596_v52  ;;  %v642_v52 = vmul.f32 1.442695, %v588_v8  ;;  %vm564_vm12 = vmand %vm500_vm3, %vm532_vm4 }
 0x18a   : > { %v632_v8 = vmul.f32 1.442695, %v583_v57  ;;  %vm501_vm1 = vcmp.le.f32.partialorder %v1182_v55, 0.0  ;;  %vm533_vm2 = vcmp.ge.f32.partialorder %v1182_v55, -5.5412636  ;;  %vm494_vm3 = vcmp.le.f32.partialorder %v1164_v44, 0.0 }
 0x18b   : > { %v660_v0 = vmul.f32 1.442695, %v597_v58  ;;  %v640_v58 = vmul.f32 1.442695, %v587_v11  ;;  %vm565_vm9 = vmand %vm501_vm1, %vm533_vm2  ;;  %vm527_vm1 = vcmp.ge.f32.partialorder %v1166_v45, -5.5412636 }
 0x18c   : > { %vm562_vm2 = vmand %vm498_vm7, %vm530_vm8  ;;  %v618_v57 = vmul.f32 1.442695, %v576_v54  ;;  %vm526_vm4 = vcmp.ge.f32.partialorder %v1164_v44, -5.5412636  ;;  %vm525_vm7 = vcmp.ge.f32.partialorder %v1162_v43, -5.5412636 }
 0x18d   : > { %961 = vpow2.f32 %v660_v0  ;;  %v581_v0 = vmin.f32 %v1146_v35, -0.0010005003  ;;  %vm560_vm8 = vmand %vm496_vm13, %vm528_vm14  ;;  %vm523_vm13 = vcmp.ge.f32.partialorder %v1158_v41, -5.5412636  ;;  %v610_v45 = vmul.f32 1.442695, %v572_v10 }
 0x18e   : > { %963 = vpow2.f32 %v658_v61  ;;  %v582_v61 = vmin.f32 %v1148_v36, -0.0010005003  ;;  %vm559_vm11 = vmand %vm495_vm0, %vm527_vm1  ;;  %vm522_vm0 = vcmp.ge.f32.partialorder %v1156_v40, -5.5412636  ;;  %v608_v44 = vmul.f32 1.442695, %v571_v7 }
 0x18f   : > { %965 = vpow2.f32 %v656_v63  ;;  %v578_v63 = vmin.f32 %v1140_v32, -0.0010005003  ;;  %v628_v11 = vmul.f32 1.442695, %v581_v0  ;;  %vm558_vm14 = vmand %vm494_vm3, %vm526_vm4  ;;  %vm521_vm3 = vcmp.ge.f32.partialorder %v1154_v39, -5.5412636 }
 0x190   : > { %967 = vpow2.f32 %v654_v3  ;;  %v579_v3 = vmin.f32 %v1142_v33, -0.0010005003  ;;  %vm557_vm1 = vmand %vm493_vm6, %vm525_vm7  ;;  %v606_v43 = vmul.f32 1.442695, %v570_v4  ;;  %vm520_vm6 = vcmp.ge.f32.partialorder %v1152_v38, -5.5412636 }
 0x191   : > { %969 = vpow2.f32 %v652_v6  ;;  %v634_v6 = vmul.f32 1.442695, %v584_v51  ;;  %v622_v51 = vmul.f32 1.442695, %v578_v63 }
 0x192   : > { %971 = vpow2.f32 %v650_v9  ;;  %v630_v9 = vmul.f32 1.442695, %v582_v61  ;;  %v624_v17 = vmul.f32 1.442695, %v579_v3 }
 0x193   : > { %973 = vpow2.f32 %v648_v12 }
 0x194   : > { %975 = vpow2.f32 %v646_v15 }
 0x195   : > { %977 = vpow2.f32 %v644_v18 }
 0x196   : > { %979 = vpow2.f32 %v642_v52  ;;  %v620_v52 = vmul.f32 1.442695, %v577_v60 }
 0x197   : > { %981 = vpow2.f32 %v640_v58  ;;  %v616_v58 = vmul.f32 1.442695, %v575_v19 }
 0x198   : > { %983 = vpow2.f32 %v638_v62 }
 0x199   : > { %985 = vpow2.f32 %v636_v2 }
 0x19a   : > { %v962_v12 = vpop.eup %961  ;;  %987 = vpow2.f32 %v634_v6 }
 0x19b   : > { %v964_v15 = vpop.eup %963  ;;  %989 = vpow2.f32 %v632_v8  ;;  %902 = vmatprep.subr.msk.mxu1 %vm565_vm9, %v962_v12  ;;  %vm492_vm9 = vcmp.le.f32.partialorder %v1160_v42, 0.0  ;;  %v604_v42 = vmul.f32 1.442695, %v569_v1 }
 0x19c   : > { %v966_v18 = vpop.eup %965  ;;  %991 = vpow2.f32 %v630_v9  ;;  %903 = vmatpush1.msk.msra.mxu1 %vm564_vm12, %v964_v15  ;;  %vm491_vm12 = vcmp.le.f32.partialorder %v1158_v41, 0.0  ;;  %vm556_vm4 = vmand %vm492_vm9, %vm524_vm10  ;;  %vm519_vm9 = vcmp.ge.f32.partialorder %v1150_v37, -5.5412636  ;;  %v602_v41 = vmul.f32 1.442695, %v568_v59 }
 0x19d   : > { %v968_v55 = vpop.eup %967  ;;  %993 = vpow2.f32 %v628_v11  ;;  %904 = vmatprep.subr.msk.mxu1 %vm563_vm15, %v966_v18  ;;  %vm490_vm15 = vcmp.le.f32.partialorder %v1156_v40, 0.0  ;;  %vm555_vm7 = vmand %vm491_vm12, %vm523_vm13  ;;  %vm518_vm12 = vcmp.ge.f32.partialorder %v1148_v36, -5.5412636  ;;  %v600_v40 = vmul.f32 1.442695, %v567_v56 }
 0x19e   : > { %v970_v50 = vpop.eup %969  ;;  %995 = vpow2.f32 %v626_v14  ;;  %905 = vmatpush1.msk.msra.mxu1 %vm562_vm2, %v968_v55  ;;  %vm489_vm2 = vcmp.le.f32.partialorder %v1154_v39, 0.0  ;;  %vm554_vm10 = vmand %vm490_vm15, %vm522_vm0  ;;  %vm517_vm15 = vcmp.ge.f32.partialorder %v1146_v35, -5.5412636  ;;  %v598_v39 = vmul.f32 1.442695, %v566_v53 }
 0x19f   : > { %v972_v49 = vpop.eup %971  ;;  %997 = vpow2.f32 %v624_v17  ;;  %906 = vmatprep.subr.msk.mxu1 %vm561_vm5, %v970_v50  ;;  %vm488_vm5 = vcmp.le.f32.partialorder %v1152_v38, 0.0  ;;  %vm553_vm13 = vmand %vm489_vm2, %vm521_vm3  ;;  %vm516_vm2 = vcmp.ge.f32.partialorder %v1144_v34, -5.5412636  ;;  %v694_v53 = vld [vmem:[%s1097_s26] sm:$0x77] }
 0x1a0   : > { %v974_v48 = vpop.eup %973  ;;  %999 = vpow2.f32 %v622_v51  ;;  %907 = vmatpush1.msk.msra.mxu1 %vm560_vm8, %v972_v49  ;;  %vm487_vm8 = vcmp.le.f32.partialorder %v1150_v37, 0.0  ;;  %vm552_vm0 = vmand %vm488_vm5, %vm520_vm6  ;;  %vm515_vm5 = vcmp.ge.f32.partialorder %v1142_v33, -5.5412636 }
 0x1a1   : > { %v976_v19 = vpop.eup %975  ;;  %1001 = vpow2.f32 %v620_v52  ;;  %908 = vmatprep.subr.msk.mxu1 %vm559_vm11, %v974_v48  ;;  %vm486_vm11 = vcmp.le.f32.partialorder %v1148_v36, 0.0  ;;  %vm551_vm3 = vmand %vm487_vm8, %vm519_vm9  ;;  %vm481_vm9 = vcmp.le.f32.partialorder %v1138_v31, 0.0 }
 0x1a2   : > { %v978_v16 = vpop.eup %977  ;;  %1003 = vpow2.f32 %v618_v57  ;;  %909 = vmatpush1.msk.msra.mxu1 %vm558_vm14, %v976_v19  ;;  %vm485_vm14 = vcmp.le.f32.partialorder %v1146_v35, 0.0  ;;  %vm550_vm6 = vmand %vm486_vm11, %vm518_vm12  ;;  %vm480_vm12 = vcmp.le.f32.partialorder %v1136_v30, 0.0 }
 0x1a3   : > { %v980_v13 = vpop.eup %979  ;;  %1005 = vpow2.f32 %v616_v58  ;;  %910 = vmatprep.subr.msk.mxu1 %vm557_vm1, %v978_v16  ;;  %vm484_vm1 = vcmp.le.f32.partialorder %v1144_v34, 0.0  ;;  %vm549_vm8 = vmand %vm485_vm14, %vm517_vm15  ;;  %vm479_vm15 = vcmp.le.f32.partialorder %v1134_v29, 0.0 }
 0x1a4   : > { %v982_v10 = vpop.eup %981  ;;  %1007 = vpow2.f32 %v614_v47  ;;  %911 = vmatpush1.msk.msra.mxu1 %vm556_vm4, %v980_v13  ;;  %vm483_vm4 = vcmp.le.f32.partialorder %v1142_v33, 0.0  ;;  %vm548_vm11 = vmand %vm484_vm1, %vm516_vm2  ;;  %vm478_vm2 = vcmp.le.f32.partialorder %v1132_v28, 0.0 }
 0x1a5   : > { %v984_v7 = vpop.eup %983  ;;  %1009 = vpow2.f32 %v612_v46  ;;  %912 = vmatprep.subr.msk.mxu1 %vm555_vm7, %v982_v10  ;;  %vm482_vm7 = vcmp.le.f32.partialorder %v1140_v32, 0.0  ;;  %vm547_vm14 = vmand %vm483_vm4, %vm515_vm5  ;;  %vm477_vm5 = vcmp.le.f32.partialorder %v1130_v27, 0.0 }
 0x1a6   : > { %v986_v4 = vpop.eup %985  ;;  %1011 = vpow2.f32 %v610_v45  ;;  %913 = vmatpush1.msk.msra.mxu1 %vm554_vm10, %v984_v7  ;;  %vm514_vm10 = vcmp.ge.f32.partialorder %v1140_v32, -5.5412636 }
 0x1a7   : > { %v988_v1 = vpop.eup %987  ;;  %1013 = vpow2.f32 %v608_v44  ;;  %914 = vmatprep.subr.msk.mxu1 %vm553_vm13, %v986_v4  ;;  %vm513_vm13 = vcmp.ge.f32.partialorder %v1138_v31, -5.5412636  ;;  %vm546_vm1 = vmand %vm482_vm7, %vm514_vm10  ;;  %vm476_vm10 = vcmp.le.f32.partialorder %v1128_v26, 0.0 }
 0x1a8   : > { %v990_v59 = vpop.eup %989  ;;  %1015 = vpow2.f32 %v606_v43  ;;  %915 = vmatpush1.msk.msra.mxu1 %vm552_vm0, %v988_v1  ;;  %vm512_vm0 = vcmp.ge.f32.partialorder %v1136_v30, -5.5412636  ;;  %vm545_vm4 = vmand %vm481_vm9, %vm513_vm13  ;;  %vm475_vm13 = vcmp.le.f32.partialorder %v1126_v25, 0.0 }
 0x1a9   : > { %v992_v56 = vpop.eup %991  ;;  %1017 = vpow2.f32 %v604_v42  ;;  %916 = vmatprep.subr.msk.mxu1 %vm551_vm3, %v990_v59  ;;  %vm511_vm3 = vcmp.ge.f32.partialorder %v1134_v29, -5.5412636  ;;  %vm544_vm7 = vmand %vm480_vm12, %vm512_vm0  ;;  %vm474_vm0 = vcmp.le.f32.partialorder %v1124_v24, 0.0 }
 0x1aa   : > { %v994_v38 = vpop.eup %993  ;;  %1019 = vpow2.f32 %v602_v41  ;;  %917 = vmatpush1.msk.msra.mxu1 %vm550_vm6, %v992_v56  ;;  %vm510_vm6 = vcmp.ge.f32.partialorder %v1132_v28, -5.5412636  ;;  %vm543_vm9 = vmand %vm479_vm15, %vm511_vm3  ;;  %vm473_vm3 = vcmp.le.f32.partialorder %v1122_v23, 0.0 }
 0x1ab   : > { %v996_v37 = vpop.eup %995  ;;  %1021 = vpow2.f32 %v600_v40  ;;  %918 = vmatprep.subr.msk.mxu1 %vm549_vm8, %v994_v38  ;;  %vm509_vm8 = vcmp.ge.f32.partialorder %v1130_v27, -5.5412636  ;;  %vm542_vm12 = vmand %vm478_vm2, %vm510_vm6  ;;  %vm472_vm6 = vcmp.le.f32.partialorder %v1120_v22, 0.0 }
 0x1ac   : > { %v998_v36 = vpop.eup %997  ;;  %1023 = vpow2.f32 %v598_v39  ;;  %919 = vmatpush1.msk.msra.mxu1 %vm548_vm11, %v996_v37  ;;  %vm508_vm11 = vcmp.ge.f32.partialorder %v1128_v26, -5.5412636  ;;  %vm541_vm15 = vmand %vm477_vm5, %vm509_vm8  ;;  %vm471_vm8 = vcmp.le.f32.partialorder %v1118_v21, 0.0 }
 0x1ad   : > { %v1000_v35 = vpop.eup %999  ;;  %920 = vmatprep.subr.msk.mxu1 %vm547_vm14, %v998_v36  ;;  %vm507_vm14 = vcmp.ge.f32.partialorder %v1126_v25, -5.5412636  ;;  %vm540_vm2 = vmand %vm476_vm10, %vm508_vm11  ;;  %vm470_vm11 = vcmp.le.f32.partialorder %v1116_v20, 0.0 }
 0x1ae   : > { %v1002_v34 = vpop.eup %1001  ;;  %921 = vmatpush1.msk.msra.mxu1 %vm546_vm1, %v1000_v35  ;;  %vm506_vm1 = vcmp.ge.f32.partialorder %v1124_v24, -5.5412636  ;;  %vm539_vm5 = vmand %vm475_vm13, %vm507_vm14 }
 0x1af   : > { %v1004_v33 = vpop.eup %1003  ;;  %922 = vmatprep.subr.msk.mxu1 %vm545_vm4, %v1002_v34  ;;  %vm505_vm4 = vcmp.ge.f32.partialorder %v1122_v23, -5.5412636  ;;  %vm538_vm10 = vmand %vm474_vm0, %vm506_vm1 }
 0x1b0   : > { %v1006_v32 = vpop.eup %1005  ;;  %923 = vmatpush1.msk.msra.mxu1 %vm544_vm7, %v1004_v33  ;;  %vm504_vm7 = vcmp.ge.f32.partialorder %v1120_v22, -5.5412636  ;;  %vm537_vm13 = vmand %vm473_vm3, %vm505_vm4 }
 0x1b1   : > { %v1008_v31 = vpop.eup %1007  ;;  %924 = vmatprep.subr.msk.mxu1 %vm543_vm9, %v1006_v32  ;;  %vm503_vm9 = vcmp.ge.f32.partialorder %v1118_v21, -5.5412636  ;;  %vm536_vm14 = vmand %vm472_vm6, %vm504_vm7 }
 0x1b2   : > { %v1010_v30 = vpop.eup %1009  ;;  %925 = vmatpush1.msk.msra.mxu1 %vm542_vm12, %v1008_v31  ;;  %vm502_vm12 = vcmp.ge.f32.partialorder %v1116_v20, -5.5412636  ;;  %vm535_vm0 = vmand %vm471_vm8, %vm503_vm9  ;;  %v695_v20 = vld [vmem:[%s1431_s1] sm:$0x7] }
 0x1b3   : > { %v1012_v29 = vpop.eup %1011  ;;  %926 = vmatprep.subr.msk.mxu1 %vm541_vm15, %v1010_v30  ;;  %vm534_vm1 = vmand %vm470_vm11, %vm502_vm12 }
 0x1b4   : > { %v1014_v28 = vpop.eup %1013  ;;  %927 = vmatpush1.msk.msra.mxu1 %vm540_vm2, %v1012_v29 }
 0x1b5   : > { %v1016_v27 = vpop.eup %1015  ;;  %928 = vmatprep.subr.msk.mxu1 %vm539_vm5, %v1014_v28 }
 0x1b6   : > { %v1018_v26 = vpop.eup %1017  ;;  %929 = vmatpush1.msk.msra.mxu1 %vm538_vm10, %v1016_v27 }
 0x1b7   : > { %v1020_v25 = vpop.eup %1019  ;;  %930 = vmatprep.subr.msk.mxu1 %vm537_vm13, %v1018_v26 }
 0x1b8   : > { %v1022_v21 = vpop.eup %1021  ;;  %931 = vmatpush1.msk.msra.mxu1 %vm536_vm14, %v1020_v25 }
 0x1b9   : > { %v1024_v24 = vpop.eup %1023  ;;  %932 = vmatprep.subr.msk.mxu1 %vm535_vm0, %v1022_v21 }
 0x1ba   : > { %933 = vmatpush1.msk.msra.mxu1 %vm534_vm1, %v1024_v24 }
 0x1bb   : > { %761 = vmatmul.mubr.f32.vlgmr.msra.gmra.mxu1 %v695_v20 }
 0x27b   : > { %v762_v23 = vpop.f32.mrf.mxu1 }
 0x27d   : > { %v764_v54 = vpop.f32.mrf.mxu1 }
 0x27e   : > { %v769_v22 = vcombine.low %v762_v23, %v764_v54 }
 0x280   : > { %v771_v60 = vadd.f32 %v769_v22, %v694_v53 }
 0x282   : > { %772 = vst [vmem:[%s1097_s26] sm:$0x77] %v771_v60 }
 0x289   : > { %v776_v61 = vld [vmem:[%s1097_s26] sm:$0x77] }
 0x28a   : > { %v777_v62 = vmax.f32 %v776_v61, 0.0 }
 0x28c   : > { %v778_v63 = vmin.f32 %v777_v62, 1.0 }
 0x28e   : > { %779 = vst [vmem:[%s1097_s26] sm:$0x77] %v778_v63 }
 0x28f PF: > { %s13_s14 = sadd.s32 1, %s1047_s14   ;;  %s1434_s12 = smov %s1043_s13 }
 0x290   : > { %p10_p5 = scmp.ge.s32.totalorder %s13_s14, 6   ;;  %s1435_s13 = smov %s1437_s15 }
 0x292   :  { %12 = sbr.rel (!%p10_p5) target bundleno = 2 (0x2), region = 76 }

</bundles_post_ra>
